<compile_context>
chip_gen: v5e
topology: v5e:2x2
jax: 0.10.0
libtpu: 0.0.40
codegen_flags: <defaults>
</compile_context>

<pallas_src>
import jax
import jax.numpy as jnp
from jax.experimental import pallas as pl
from jax.experimental.pallas import tpu as pltpu


def deconv1d_kernel(x_ref, w_ref, shift_ref, perm_ref, o_ref):
    # x_ref:     [C_in, TB*L]        (TB batches folded into lanes)
    # w_ref:     [K, C_out, C_in]    (BN scale already folded in)
    # shift_ref: [C_out, 1]          (beta - running_mean * scale)
    # perm_ref:  [K, L, K*L]         one-hot interleave matrices P[k,l,K*l+k]=1
    # o_ref:     [TB, C_out, K*L]    final interleaved layout
    x = x_ref[...]                                   # [C_in, TB*L]
    shift = shift_ref[...]                           # [C_out, 1]
    K = w_ref.shape[0]
    TB = o_ref.shape[0]
    L = perm_ref.shape[1]

    # One lane-dense matmul per tap over the whole batch group, fused BN+ReLU.
    ys = []
    for k in range(K):                               # K is static (=2)
        y = jnp.dot(w_ref[k], x, preferred_element_type=jnp.float32)
        ys.append(jnp.maximum(y + shift, 0.0))       # [C_out, TB*L]

    # Interleave taps along the length axis via one-hot permutation matmuls
    # and store the final [C_out, 2L] slab per batch (lane-dense store).
    for b in range(TB):                              # TB is static & small
        out_b = jnp.dot(ys[0][:, b * L:(b + 1) * L], perm_ref[0],
                        preferred_element_type=jnp.float32)
        for k in range(1, K):
            out_b = out_b + jnp.dot(ys[k][:, b * L:(b + 1) * L], perm_ref[k],
                                    preferred_element_type=jnp.float32)
        o_ref[b] = out_b.astype(o_ref.dtype)


def _pick_batch_tile(B, L, lane_cap=4096):
    """Batches folded per grid step.  Prefer the whole batch (one wide matmul,
    no grid overhead); only tile when the lane extent would blow the cap, and
    then only with 128-lane-aligned partial tiles."""
    if B * L <= lane_cap:
        return B
    for tb in range(B, 0, -1):
        if B % tb == 0 and tb * L <= lane_cap and (tb * L) % 128 == 0:
            return tb
    return B


def deconv1d_forward(x, w, gamma, beta, running_mean, running_var,
                     *, eps=1e-5, stride=2):
    """x: [B, C_in, L] -> [B, C_out, L*stride]  (kernel_size == stride, pad=0)."""
    B, C_in, L = x.shape
    C_in_w, C_out, K = w.shape
    assert C_in_w == C_in and K == stride

    # Fold BatchNorm (eval mode) into the weight (scale) and a shift vector.
    inv_std = jax.lax.rsqrt(running_var + eps)
    scale = gamma * inv_std                                   # [C_out]
    shift = (beta - running_mean * scale).reshape(C_out, 1)   # [C_out, 1]

    # Weight layout glue (tiny, done once): [C_in, C_out, K] -> [K, C_out, C_in],
    # with BN scale folded into the C_out axis.
    w_t = (jnp.transpose(w, (2, 1, 0)) * scale[None, :, None]).astype(jnp.float32)

    # One-hot interleave matrices: P[k, l, K*l + k] = 1.
    m_idx = jnp.arange(K * L)[None, None, :]
    target = (K * jnp.arange(L)[None, :, None] + jnp.arange(K)[:, None, None])
    perm = (m_idx == target).astype(jnp.float32)              # [K, L, K*L]

    # Fold the batch into the lane axis of the matmul input.
    x2 = jnp.transpose(x, (1, 0, 2)).reshape(C_in, B * L)     # [C_in, B*L]

    TB = _pick_batch_tile(B, L)
    n_steps = B // TB

    out = pl.pallas_call(
        deconv1d_kernel,
        out_shape=jax.ShapeDtypeStruct((B, C_out, K * L), jnp.float32),
        grid_spec=pltpu.PrefetchScalarGridSpec(
            num_scalar_prefetch=0,
            grid=(n_steps,),
            in_specs=[
                pl.BlockSpec((C_in, TB * L), lambda g: (0, g)),
                pl.BlockSpec((K, C_out, C_in), lambda g: (0, 0, 0)),
                pl.BlockSpec((C_out, 1), lambda g: (0, 0)),
                pl.BlockSpec((K, L, K * L), lambda g: (0, 0, 0)),
            ],
            out_specs=pl.BlockSpec((TB, C_out, K * L), lambda g: (g, 0, 0)),
        ),
        compiler_params=pltpu.CompilerParams(
            dimension_semantics=("parallel",),
            vmem_limit_bytes=32 * 1024 * 1024,
        ),
    )(x2, w_t, shift, perm)

    # Kernel already emitted the final [B, C_out, L*stride] layout.
    return out


def _reference(x, w, gamma, beta, running_mean, running_var, eps=1e-5):
    # Pure-JAX reference of ConvTranspose1d(k=2, stride=2, pad=0) + BN(eval) + ReLU.
    B, C_in, L = x.shape
    _, C_out, K = w.shape
    y = jnp.einsum('bcl,cok->bolk', x, w).reshape(B, C_out, L * K)
    scale = (gamma / jnp.sqrt(running_var + eps))[None, :, None]
    shift = (beta - running_mean * gamma / jnp.sqrt(running_var + eps))[None, :, None]
    return jnp.maximum(y * scale + shift, 0.0)


if __name__ == "__main__":
    # Small shapes consistent with the module: x is [batch, in_channels, dim1].
    B, C_in, C_out, L = 2, 4, 8, 16
    K = 2          # kernel_size
    STRIDE = 2     # stride == kernel_size (module defaults)

    key = jax.random.PRNGKey(0)
    k_x, k_w, k_g, k_b, k_m, k_v = jax.random.split(key, 6)

    x = jax.random.normal(k_x, (B, C_in, L), dtype=jnp.float32)
    # ConvTranspose1d weight: [in_channels, out_channels, kernel_size], bias=False.
    w = jax.random.normal(k_w, (C_in, C_out, K), dtype=jnp.float32) * 0.5
    # Deterministic, non-trivial BatchNorm parameters / running stats (eval mode).
    gamma = 1.0 + 0.1 * jax.random.normal(k_g, (C_out,), dtype=jnp.float32)
    beta = 0.1 * jax.random.normal(k_b, (C_out,), dtype=jnp.float32)
    running_mean = 0.1 * jax.random.normal(k_m, (C_out,), dtype=jnp.float32)
    running_var = jnp.abs(1.0 + 0.1 * jax.random.normal(k_v, (C_out,), dtype=jnp.float32))

    # TODO(synk): dropout is stochastic (train-mode); inference semantics used -> identity.
    out = deconv1d_forward(x, w, gamma, beta, running_mean, running_var, stride=STRIDE)
    out = jax.block_until_ready(out)

    ref = _reference(x, w, gamma, beta, running_mean, running_var)
    assert out.shape == (B, C_out, L * STRIDE)
    assert jnp.allclose(out, ref, atol=1e-5, rtol=1e-5)

    print("KERNEL_OK")
</pallas_src>

<mosaic_0001>
module attributes {stable_mosaic.version = 11 : i64} {
  func.func @deconv1d_kernel(%arg0: i32, %arg1: memref<4x32xf32, #tpu.memory_space<vmem>>, %arg2: memref<2x8x4xf32, #tpu.memory_space<vmem>>, %arg3: memref<8x1xf32, #tpu.memory_space<vmem>>, %arg4: memref<2x16x32xf32, #tpu.memory_space<vmem>>, %arg5: memref<2x8x32xf32, #tpu.memory_space<vmem>>) attributes {dimension_semantics = [#tpu.dimension_semantics<parallel>], iteration_bounds = array<i64: 1>, scalar_prefetch = 0 : i64, scratch_operands = 0 : i64, tpu.core_type = #tpu.core_type<tc>, window_params = [{transform_indices = @transform_0, window_bounds = array<i64: 4, 32>}, {pipeline_mode = #tpu.pipeline_mode<synchronous>, transform_indices = @transform_1, window_bounds = array<i64: 2, 8, 4>}, {pipeline_mode = #tpu.pipeline_mode<synchronous>, transform_indices = @transform_2, window_bounds = array<i64: 8, 1>}, {pipeline_mode = #tpu.pipeline_mode<synchronous>, transform_indices = @transform_3, window_bounds = array<i64: 2, 16, 32>}, {transform_indices = @transform_4, window_bounds = array<i64: 2, 8, 32>}]} {
    %c0 = arith.constant 0 : index
    %c0_0 = arith.constant 0 : index
    %0 = vector.load %arg1[%c0, %c0_0] : memref<4x32xf32, #tpu.memory_space<vmem>>, vector<4x32xf32>
    %c0_1 = arith.constant 0 : index
    %c0_2 = arith.constant 0 : index
    %1 = vector.load %arg3[%c0_1, %c0_2] : memref<8x1xf32, #tpu.memory_space<vmem>>, vector<8x1xf32>
    %c0_3 = arith.constant 0 : index
    %c0_4 = arith.constant 0 : index
    %c0_5 = arith.constant 0 : index
    %2 = vector.load %arg2[%c0_3, %c0_4, %c0_5] : memref<2x8x4xf32, #tpu.memory_space<vmem>>, vector<1x8x4xf32>
    %3 = vector.shape_cast %2 : vector<1x8x4xf32> to vector<8x4xf32>
    %cst = arith.constant dense<0.000000e+00> : vector<8x32xf32>
    %4 = tpu.matmul %3, %0, %cst {dimension_numbers = #tpu.dot_dimension_numbers<[1], [0], [0], [1], [0, 0, 1, 1], [], []>} : vector<8x4xf32>, vector<4x32xf32>, vector<8x32xf32> -> vector<8x32xf32>
    %5 = vector.broadcast %1 : vector<8x1xf32> to vector<8x32xf32>
    %6 = arith.addf %4, %5 : vector<8x32xf32>
    %cst_6 = arith.constant 0.000000e+00 : f32
    %7 = vector.broadcast %cst_6 : f32 to vector<8x32xf32>
    %8 = arith.maximumf %6, %7 : vector<8x32xf32>
    %c1 = arith.constant 1 : index
    %c0_7 = arith.constant 0 : index
    %c0_8 = arith.constant 0 : index
    %9 = vector.load %arg2[%c1, %c0_7, %c0_8] : memref<2x8x4xf32, #tpu.memory_space<vmem>>, vector<1x8x4xf32>
    %10 = vector.shape_cast %9 : vector<1x8x4xf32> to vector<8x4xf32>
    %cst_9 = arith.constant dense<0.000000e+00> : vector<8x32xf32>
    %11 = tpu.matmul %10, %0, %cst_9 {dimension_numbers = #tpu.dot_dimension_numbers<[1], [0], [0], [1], [0, 0, 1, 1], [], []>} : vector<8x4xf32>, vector<4x32xf32>, vector<8x32xf32> -> vector<8x32xf32>
    %12 = vector.broadcast %1 : vector<8x1xf32> to vector<8x32xf32>
    %13 = arith.addf %11, %12 : vector<8x32xf32>
    %cst_10 = arith.constant 0.000000e+00 : f32
    %14 = vector.broadcast %cst_10 : f32 to vector<8x32xf32>
    %15 = arith.maximumf %13, %14 : vector<8x32xf32>
    %16 = vector.extract_strided_slice %8 {offsets = [0, 0], sizes = [8, 16], strides = [1, 1]} : vector<8x32xf32> to vector<8x16xf32>
    %c0_11 = arith.constant 0 : index
    %c0_12 = arith.constant 0 : index
    %c0_13 = arith.constant 0 : index
    %17 = vector.load %arg4[%c0_11, %c0_12, %c0_13] : memref<2x16x32xf32, #tpu.memory_space<vmem>>, vector<1x16x32xf32>
    %18 = vector.shape_cast %17 : vector<1x16x32xf32> to vector<16x32xf32>
    %cst_14 = arith.constant dense<0.000000e+00> : vector<8x32xf32>
    %19 = tpu.matmul %16, %18, %cst_14 {dimension_numbers = #tpu.dot_dimension_numbers<[1], [0], [0], [1], [0, 0, 1, 1], [], []>} : vector<8x16xf32>, vector<16x32xf32>, vector<8x32xf32> -> vector<8x32xf32>
    %20 = vector.extract_strided_slice %15 {offsets = [0, 0], sizes = [8, 16], strides = [1, 1]} : vector<8x32xf32> to vector<8x16xf32>
    %c1_15 = arith.constant 1 : index
    %c0_16 = arith.constant 0 : index
    %c0_17 = arith.constant 0 : index
    %21 = vector.load %arg4[%c1_15, %c0_16, %c0_17] : memref<2x16x32xf32, #tpu.memory_space<vmem>>, vector<1x16x32xf32>
    %22 = vector.shape_cast %21 : vector<1x16x32xf32> to vector<16x32xf32>
    %cst_18 = arith.constant dense<0.000000e+00> : vector<8x32xf32>
    %23 = tpu.matmul %20, %22, %cst_18 {dimension_numbers = #tpu.dot_dimension_numbers<[1], [0], [0], [1], [0, 0, 1, 1], [], []>} : vector<8x16xf32>, vector<16x32xf32>, vector<8x32xf32> -> vector<8x32xf32>
    %24 = arith.addf %19, %23 : vector<8x32xf32>
    %c0_19 = arith.constant 0 : index
    %c0_20 = arith.constant 0 : index
    %c0_21 = arith.constant 0 : index
    %25 = vector.load %arg5[%c0_19, %c0_20, %c0_21] : memref<2x8x32xf32, #tpu.memory_space<vmem>>, vector<1x8x32xf32>
    %26 = vector.shape_cast %25 : vector<1x8x32xf32> to vector<8x32xf32>
    %27 = vector.shape_cast %24 : vector<8x32xf32> to vector<1x8x32xf32>
    tpu.vector_store %arg5[%c0_19, %c0_20, %c0_21], %27 {strides = array<i32>} : memref<2x8x32xf32, #tpu.memory_space<vmem>>, vector<1x8x32xf32>,
    %28 = vector.extract_strided_slice %8 {offsets = [0, 16], sizes = [8, 16], strides = [1, 1]} : vector<8x32xf32> to vector<8x16xf32>
    %c0_22 = arith.constant 0 : index
    %c0_23 = arith.constant 0 : index
    %c0_24 = arith.constant 0 : index
    %29 = vector.load %arg4[%c0_22, %c0_23, %c0_24] : memref<2x16x32xf32, #tpu.memory_space<vmem>>, vector<1x16x32xf32>
    %30 = vector.shape_cast %29 : vector<1x16x32xf32> to vector<16x32xf32>
    %cst_25 = arith.constant dense<0.000000e+00> : vector<8x32xf32>
    %31 = tpu.matmul %28, %30, %cst_25 {dimension_numbers = #tpu.dot_dimension_numbers<[1], [0], [0], [1], [0, 0, 1, 1], [], []>} : vector<8x16xf32>, vector<16x32xf32>, vector<8x32xf32> -> vector<8x32xf32>
    %32 = vector.extract_strided_slice %15 {offsets = [0, 16], sizes = [8, 16], strides = [1, 1]} : vector<8x32xf32> to vector<8x16xf32>
    %c1_26 = arith.constant 1 : index
    %c0_27 = arith.constant 0 : index
    %c0_28 = arith.constant 0 : index
    %33 = vector.load %arg4[%c1_26, %c0_27, %c0_28] : memref<2x16x32xf32, #tpu.memory_space<vmem>>, vector<1x16x32xf32>
    %34 = vector.shape_cast %33 : vector<1x16x32xf32> to vector<16x32xf32>
    %cst_29 = arith.constant dense<0.000000e+00> : vector<8x32xf32>
    %35 = tpu.matmul %32, %34, %cst_29 {dimension_numbers = #tpu.dot_dimension_numbers<[1], [0], [0], [1], [0, 0, 1, 1], [], []>} : vector<8x16xf32>, vector<16x32xf32>, vector<8x32xf32> -> vector<8x32xf32>
    %36 = arith.addf %31, %35 : vector<8x32xf32>
    %c1_30 = arith.constant 1 : index
    %c0_31 = arith.constant 0 : index
    %c0_32 = arith.constant 0 : index
    %37 = vector.load %arg5[%c1_30, %c0_31, %c0_32] : memref<2x8x32xf32, #tpu.memory_space<vmem>>, vector<1x8x32xf32>
    %38 = vector.shape_cast %37 : vector<1x8x32xf32> to vector<8x32xf32>
    %39 = vector.shape_cast %36 : vector<8x32xf32> to vector<1x8x32xf32>
    tpu.vector_store %arg5[%c1_30, %c0_31, %c0_32], %39 {strides = array<i32>} : memref<2x8x32xf32, #tpu.memory_space<vmem>>, vector<1x8x32xf32>,
    return
  }
  func.func @transform_0(%arg0: i32) -> (i32, i32) {
    %c0_i32 = arith.constant 0 : i32
    %c0_i32_0 = arith.constant 0 : i32
    return %c0_i32, %arg0 : i32, i32
  }
  func.func @transform_1(%arg0: i32) -> (i32, i32, i32) {
    %c0_i32 = arith.constant 0 : i32
    %c0_i32_0 = arith.constant 0 : i32
    %c0_i32_1 = arith.constant 0 : i32
    %c0_i32_2 = arith.constant 0 : i32
    return %c0_i32, %c0_i32_0, %c0_i32_1 : i32, i32, i32
  }
  func.func @transform_2(%arg0: i32) -> (i32, i32) {
    %c0_i32 = arith.constant 0 : i32
    %c0_i32_0 = arith.constant 0 : i32
    %c0_i32_1 = arith.constant 0 : i32
    return %c0_i32, %c0_i32_0 : i32, i32
  }
  func.func @transform_3(%arg0: i32) -> (i32, i32, i32) {
    %c0_i32 = arith.constant 0 : i32
    %c0_i32_0 = arith.constant 0 : i32
    %c0_i32_1 = arith.constant 0 : i32
    %c0_i32_2 = arith.constant 0 : i32
    return %c0_i32, %c0_i32_0, %c0_i32_1 : i32, i32, i32
  }
  func.func @transform_4(%arg0: i32) -> (i32, i32, i32) {
    %c0_i32 = arith.constant 0 : i32
    %c0_i32_0 = arith.constant 0 : i32
    %c0_i32_1 = arith.constant 0 : i32
    return %arg0, %c0_i32, %c0_i32_0 : i32, i32, i32
  }
}

</mosaic_0001>

<bundles_post_ra>
// kernel: tpu_custom_call.1
= control target key start
LH: loop header
LB: loop body
LE: loop exit
PB: predicated region body
PF: predicated region fallthrough
CT: control target
= control target key end

     0   :  { %9 = vsyncpa [#allocation3], 0  ;;  %s347_s0 = inlined_call_operand.vmem [shape: f32[4,32], index: 0, kind: input, shape index: {}]   ;;  %s348_s1 = inlined_call_operand.vmem [shape: f32[2,8,4], index: 1, kind: input, shape index: {}]   ;;  %s349_s2 = inlined_call_operand.vmem [shape: f32[8,1], index: 2, kind: input, shape index: {}]   ;;  %s350_s3 = inlined_call_operand.hbm [shape: f32[2,16,32], index: 3, kind: input, shape index: {}]   ;;  %s351_s4 = inlined_call_operand.hbm [shape: f32[2,8,32], index: 4, kind: output, shape index: {}]  }
   0x1   :  { %10 = vsyncpa [#allocation4], 0  ;;  %s21_s17 = sshll.u32 %s350_s3, 4  ;;  %s292_s18 = smov [#allocation2]   ;;  %s22_s17 = int_to_ptr.hbm [resolvable:$true] %s21_s17 }
   0x2   :  { %s23_s19 = sshll.u32 %s292_s18, 4  ;;  %s293_s20 = smov 128   ;;  %s24_s19 = int_to_ptr.vmem [resolvable:$true] %s23_s19 }
   0x3   :  { %s294_s21 = smov 8  }
   0x4   :  { %29 = dma.hbm_to_vmem [thread:$0]  %s22_s17, 512, %s24_s19, [#allocation3], %s293_s20, %s293_s20, %s294_s21  }
   0x5   :  { %288 = dma.done.wait [#allocation3], 512  }
   0x6   :  { %289 = vsyncadd [#allocation3], 4294966784  ;;  %v295_v0 = vmov 0   ;;  %vm46_vm0 = vcmask 1043456   ;;  %vm42_vm1 = vcmask 31744   ;;  %v36_v2 = vld [vmem:[%s348_s1] sm:$0xff] }
   0x7   :  { %239 = vset.pattern.permute.xlu0 %v295_v0  ;;  %v34_v1 = vld [vmem:[%s347_s0] sm:$0xf]  ;;  %v226_v3 = vld [vmem:[%s348_s1 + $0x8] sm:$0xff]  ;;  %v101_v5 = vld [vmem:[#allocation2 + $0x18] sm:$0xff]  ;;  %vm102_vm2 = vcmask 130048   ;;  %s296_s0 = smov 112  }
   0x8   :  { %224 = vmatpush.msk.msra.mxu0 %vm46_vm0, %v34_v1  ;;  %227 = vmatpush.msk.msra.mxu1 %vm46_vm0, %v34_v1  ;;  %v35_v4 = vld [vmem:[%s349_s2] sm:$0xff]  ;;  %v98_v6 = vld [vmem:[#allocation2 + $0x8] sm:$0xff]  ;;  %v100_v7 = vld [vmem:[#allocation2 + $0x10] sm:$0xff]  ;;  %vm149_vm3 = vcmask 261120   ;;  %s297_s1 = smov [#allocation5]   ;;  %s211_s5 = sshll.u32 %s351_s4, 4  ;;  %s212_s5 = int_to_ptr.hbm [resolvable:$true] %s211_s5 }
   0x9   :  { %225 = vmatmul.msk.f32.vlgmr.msra.gmra.mxu0 %vm42_vm1, %v36_v2  ;;  %228 = vmatmul.msk.f32.vlgmr.msra.gmra.mxu1 %vm42_vm1, %v226_v3  ;;  %v97_v8 = vld [vmem:[#allocation2] sm:$0xff]  ;;  %s209_s2 = sshll.u32 %s297_s1, 4  ;;  %s210_s2 = int_to_ptr.vmem [resolvable:$true] %s209_s2 }
   0xa   :  { %39 = vperm.xlu0 %239, %v35_v4   ;;  %120 = vmatpush.msra.mxu2 %v101_v5 }
   0xb   :  { %143 = vmatpush.msra.mxu3 %v98_v6  ;;  %173 = vmatpush.msrb.mxu0 %v101_v5 }
   0xc   :  { %197 = vmatpush.msrb.mxu1 %v98_v6  ;;  %121 = vmatpush.msra.mxu2 %v100_v7 }
   0xd   :  { %144 = vmatpush.msra.mxu3 %v97_v8  ;;  %174 = vmatpush.msrb.mxu0 %v100_v7 }
   0xe   :  { %198 = vmatpush.msrb.mxu1 %v97_v8 }
  0x7c   :  { %v40_v9 = vpop.permute.xlu0 %39 }
  0x86   :  { %v67_v10 = vpop.f32.mrf.mxu0  ;;  %v93_v11 = vpop.f32.mrf.mxu1 }
  0x87   :  { %v68_v12 = vadd.f32 %v67_v10, %v40_v9  ;;  %v94_v13 = vadd.f32 %v93_v11, %v40_v9 }
  0x89   :  { %v70_v14 = vmax.f32 %v68_v12, 0.0  ;;  %v96_v15 = vmax.f32 %v94_v13, 0.0 }
  0x8b   :  { %155 = vrot.lane.b32.xlu0 %v96_v15, %s296_s0  ;;  %229 = vmatmul.msk.f32.vlgmr.msra.gmra.mxu2 %vm102_vm2, %v96_v15 }
  0x8c   :  { %179 = vrot.lane.b32.xlu1 %v70_v14, %s296_s0  ;;  %230 = vmatmul.msk.f32.vlgmr.msra.gmra.mxu3 %vm102_vm2, %v70_v14 }
  0xfd   :  { %v156_v16 = vpop.permute.xlu0 %155 }
  0xfe   :  { %v180_v17 = vpop.permute.xlu1 %179  ;;  %231 = vmatmul.msk.f32.vlgmr.msrb.gmra.mxu0 %vm102_vm2, %v156_v16 }
  0xff   :  { %232 = vmatmul.msk.f32.vlgmr.msrb.gmra.mxu1 %vm102_vm2, %v180_v17 }
 0x10e   :  { %v123_v18 = vpop.f32.mrf.mxu2 }
 0x10f   :  { %v146_v19 = vpop.f32.mrf.mxu3 }
 0x110   :  { %v147_v20 = vadd.f32 %v146_v19, %v123_v18 }
 0x112   :  { %150 = vst.msk [vmem:[#allocation5] sm:$0xff] %vm149_vm3, %v147_v20 }
 0x17b   :  { %v176_v21 = vpop.f32.mrf.mxu0 }
 0x17c   :  { %v200_v22 = vpop.f32.mrf.mxu1 }
 0x17d   :  { %v201_v23 = vadd.f32 %v200_v22, %v176_v21 }
 0x17f   :  { %204 = vst.msk [vmem:[#allocation5 + $0x8] sm:$0xff] %vm149_vm3, %v201_v23 }
 0x180   :  { %217 = dma.vmem_to_hbm [thread:$0]  %s210_s2, 256, %s212_s5, [#allocation4], %s293_s20, %s293_s20, %s294_s21  }
 0x181   :  { %290 = dma.done.wait [#allocation4], 256  }
 0x182   :  { %291 = vsyncadd [#allocation4], 4294967040 }
 0x183   :  { %222 = vsyncpa [#allocation3], 1 }
 0x184   :  { %223 = vsyncpa [#allocation4], 1 }

</bundles_post_ra>
